<compile_context>
chip_gen: v6e
topology: v6e:2x2x1
jax: 0.10.0
libtpu: 0.0.40
codegen_flags: <defaults>
</compile_context>

<pallas_src>
import functools

import jax
import jax.numpy as jnp
from jax.experimental import pallas as pl
from jax.experimental.pallas import tpu as pltpu


def _round_up(x, m):
    return ((x + m - 1) // m) * m


def _sim_contrastive_kernel(x1_ref, x2_ref, out_ref,
                            acc_s, acc_ss1, acc_ss2, partial_ref,
                            *, margin, batch, tm, tn, use_bf16_matmul):
    i = pl.program_id(0)
    j = pl.program_id(1)
    k = pl.program_id(2)
    nk = pl.num_programs(2)

    # New i row-tile: reset this core's running partial loss.
    @pl.when((j == 0) & (k == 0))
    def _():
        partial_ref[0] = jnp.float32(0.0)

    # New (i, j) tile: reset the K-reduction accumulators.
    @pl.when(k == 0)
    def _():
        acc_s[...] = jnp.zeros_like(acc_s)
        acc_ss1[...] = jnp.zeros_like(acc_ss1)
        acc_ss2[...] = jnp.zeros_like(acc_ss2)

    a = x1_ref[...].astype(jnp.float32)          # (TM, TK)
    b = x2_ref[...].astype(jnp.float32)          # (TN, TK)

    # Contract both last (lane) dims: A @ B^T with no materialized transpose.
    nt = (((1,), (1,)), ((), ()))
    if use_bf16_matmul:
        # Optional v6e/v7x fast path (changes cosines by ~1e-2 rel; keep accumulation f32).
        acc_s[...] += jax.lax.dot_general(
            a.astype(jnp.bfloat16), b.astype(jnp.bfloat16), nt,
            preferred_element_type=jnp.float32)
    else:
        acc_s[...] += jax.lax.dot_general(a, b, nt,
                                          preferred_element_type=jnp.float32)

    # Per-row sums of squares, accumulated directly in broadcast-ready layouts
    # ((TM,1) and (1,TN)) via tiny MXU matmuls against a ones vector -> no relayout.
    ones_k = jnp.ones((1, a.shape[1]), jnp.float32)
    acc_ss1[...] += jax.lax.dot_general(a * a, ones_k, nt,
                                        preferred_element_type=jnp.float32)  # (TM, 1)
    acc_ss2[...] += jax.lax.dot_general(ones_k, b * b, nt,
                                        preferred_element_type=jnp.float32)  # (1, TN)

    # Last K chunk: normalize, mask, reduce, accumulate into this i-tile's partial.
    @pl.when(k == nk - 1)
    def _():
        eps2 = jnp.float32(1e-16)                                  # (1e-8)^2
        inv1 = jax.lax.rsqrt(jnp.maximum(acc_ss1[...], eps2))      # (TM, 1)
        inv2 = jax.lax.rsqrt(jnp.maximum(acc_ss2[...], eps2))      # (1, TN)
        cos = acc_s[...] * inv1 * inv2                             # (TM, TN)

        row = i * tm + jax.lax.broadcasted_iota(jnp.int32, (tm, tn), 0)
        col = j * tn + jax.lax.broadcasted_iota(jnp.int32, (tm, tn), 1)

        # Fused positive/negative terms: one select, one reduction.
        contrib = jnp.where(row == col,
                            1.0 - cos,
                            jnp.maximum(cos - jnp.float32(margin), 0.0))
        # Drop padded rows/cols.
        contrib = jnp.where((row < batch) & (col < batch), contrib, jnp.float32(0.0))

        partial_ref[0] += jnp.sum(contrib)

        # Publish the running partial for this i tile into out[i*8 + 0, 0].
        r8 = jax.lax.broadcasted_iota(jnp.int32, (8, 128), 0)
        c128 = jax.lax.broadcasted_iota(jnp.int32, (8, 128), 1)
        out_ref[...] = jnp.where((r8 == 0) & (c128 == 0),
                                 partial_ref[0], jnp.float32(0.0))


def similarity_contrastive_loss(x1, x2, margin=0.5, *,
                                block_b=256, block_d=512,
                                use_bf16_matmul=False):
    """x1, x2: (B, D) arrays. Returns scalar float32 loss.

    Tile notes: defaults (256, 512) fit the default scoped VMEM on v5e/v6e/v7x.
      v5e: 128-aligned tiles are enough (4x128^2 MXU); keep f32.
      v6e: 256-aligned tiles; optionally use_bf16_matmul=True for full MXU rate.
      v7x: keep tiles <= 256-512 (64 MiB physical VMEM); i axis runs on both TCs.
    """
    assert x1.shape == x2.shape and x1.ndim == 2
    B, D = x1.shape

    block_b = _round_up(block_b, 8)
    block_d = _round_up(block_d, 128)
    tm = min(block_b, _round_up(B, 8))
    tn = tm
    tk = min(block_d, _round_up(D, 128))

    bp = _round_up(B, tm)
    dp = _round_up(D, tk)

    x1 = x1.astype(jnp.float32)
    x2 = x2.astype(jnp.float32)
    if (bp, dp) != (B, D):
        x1 = jnp.pad(x1, ((0, bp - B), (0, dp - D)))
        x2 = jnp.pad(x2, ((0, bp - B), (0, dp - D)))

    gi, gj, gk = bp // tm, bp // tn, dp // tk

    kernel = functools.partial(_sim_contrastive_kernel,
                               margin=float(margin), batch=B, tm=tm, tn=tn,
                               use_bf16_matmul=bool(use_bf16_matmul))

    partials = pl.pallas_call(
        kernel,
        out_shape=jax.ShapeDtypeStruct((gi * 8, 128), jnp.float32),
        grid_spec=pltpu.PrefetchScalarGridSpec(
            num_scalar_prefetch=0,
            grid=(gi, gj, gk),
            in_specs=[
                pl.BlockSpec((tm, tk), lambda i, j, k: (i, k)),   # x1 row tile
                pl.BlockSpec((tn, tk), lambda i, j, k: (j, k)),   # x2 row tile
            ],
            out_specs=pl.BlockSpec((8, 128), lambda i, j, k: (i, 0)),
            scratch_shapes=[
                pltpu.VMEM((tm, tn), jnp.float32),   # raw dot-product accumulator
                pltpu.VMEM((tm, 1), jnp.float32),    # sum(x1^2) per row
                pltpu.VMEM((1, tn), jnp.float32),    # sum(x2^2) per row
                pltpu.SMEM((1,), jnp.float32),       # per-i-tile partial loss
            ],
        ),
        compiler_params=pltpu.CompilerParams(
            dimension_semantics=("parallel", "arbitrary", "arbitrary")),
    )(x1, x2)

    return jnp.sum(partials) / jnp.float32(B)


def _reference_loss(x1, x2, margin=0.5):
    # Pure-JAX reference mirroring the PyTorch forward.
    eps = 1e-8
    n1 = jnp.maximum(jnp.linalg.norm(x1, axis=-1, keepdims=True), eps)
    n2 = jnp.maximum(jnp.linalg.norm(x2, axis=-1, keepdims=True), eps)
    cos = (x1 / n1) @ (x2 / n2).T
    B = x1.shape[0]
    eye = jnp.eye(B, dtype=x1.dtype)
    pos = (1.0 - cos) * eye
    neg = jnp.maximum(cos - margin, 0.0) * (1.0 - eye)
    return (pos.sum() + neg.sum()) / B


if __name__ == "__main__":
    key = jax.random.PRNGKey(0)
    k1, k2, k3, k4 = jax.random.split(key, 4)

    # Case 1: small embedding batch (single-tile path).
    B, D = 8, 128
    x1 = jax.random.normal(k1, (B, D), dtype=jnp.float32)
    x2 = jax.random.normal(k2, (B, D), dtype=jnp.float32)
    loss = jax.block_until_ready(similarity_contrastive_loss(x1, x2, margin=0.5))
    ref = _reference_loss(x1, x2, margin=0.5)
    assert jnp.allclose(loss, ref, atol=1e-5, rtol=1e-5), (loss, ref)

    # Case 2: multi-tile grid with padding/masking (non-divisible B and D).
    B2, D2 = 40, 384
    y1 = jax.random.normal(k3, (B2, D2), dtype=jnp.float32)
    y2 = jax.random.normal(k4, (B2, D2), dtype=jnp.float32)
    loss2 = jax.block_until_ready(
        similarity_contrastive_loss(y1, y2, margin=0.5, block_b=16, block_d=128))
    ref2 = _reference_loss(y1, y2, margin=0.5)
    assert jnp.allclose(loss2, ref2, atol=1e-5, rtol=1e-5), (loss2, ref2)

    print("KERNEL_OK")
</pallas_src>

<mosaic_0001>
module attributes {stable_mosaic.version = 11 : i64} {
  func.func @_sim_contrastive_kernel(%arg0: i32, %arg1: i32, %arg2: i32, %arg3: memref<8x128xf32, #tpu.memory_space<vmem>>, %arg4: memref<8x128xf32, #tpu.memory_space<vmem>>, %arg5: memref<8x128xf32, #tpu.memory_space<vmem>>, %arg6: memref<8x8xf32, #tpu.memory_space<vmem>>, %arg7: memref<8x1xf32, #tpu.memory_space<vmem>>, %arg8: memref<1x8xf32, #tpu.memory_space<vmem>>, %arg9: memref<1xf32, #tpu.memory_space<smem>>) attributes {dimension_semantics = [#tpu.dimension_semantics<parallel>, #tpu.dimension_semantics<arbitrary>, #tpu.dimension_semantics<arbitrary>], iteration_bounds = array<i64: 1, 1, 1>, scalar_prefetch = 0 : i64, scratch_operands = 4 : i64, tpu.core_type = #tpu.core_type<tc>, window_params = [{transform_indices = @transform_0, window_bounds = array<i64: 8, 128>}, {transform_indices = @transform_1, window_bounds = array<i64: 8, 128>}, {transform_indices = @transform_2, window_bounds = array<i64: 8, 128>}]} {
    %c0_i32 = arith.constant 0 : i32
    %0 = arith.cmpi eq, %arg1, %c0_i32 : i32
    %c0_i32_0 = arith.constant 0 : i32
    %1 = arith.cmpi eq, %arg2, %c0_i32_0 : i32
    %2 = arith.andi %0, %1 : i1
    %3 = arith.extui %2 : i1 to i32
    %c0_i32_1 = arith.constant 0 : i32
    %4 = arith.cmpi ne, %3, %c0_i32_1 : i32
    scf.if %4 {
      %cst_24 = arith.constant 0.000000e+00 : f32
      %c0_25 = arith.constant 0 : index
      %28 = memref.load %arg9[%c0_25] : memref<1xf32, #tpu.memory_space<smem>>
      memref.store %cst_24, %arg9[%c0_25] : memref<1xf32, #tpu.memory_space<smem>>
    } else {
    }
    %c0_i32_2 = arith.constant 0 : i32
    %5 = arith.cmpi eq, %arg2, %c0_i32_2 : i32
    %6 = arith.extui %5 : i1 to i32
    %c0_i32_3 = arith.constant 0 : i32
    %7 = arith.cmpi ne, %6, %c0_i32_3 : i32
    scf.if %7 {
      %cst_24 = arith.constant 0.000000e+00 : f32
      %28 = vector.broadcast %cst_24 : f32 to vector<8x8xf32>
      %c0_25 = arith.constant 0 : index
      %c0_26 = arith.constant 0 : index
      %29 = vector.load %arg6[%c0_25, %c0_26] : memref<8x8xf32, #tpu.memory_space<vmem>>, vector<8x8xf32>
      tpu.vector_store %arg6[%c0_25, %c0_26], %28 {strides = array<i32>} : memref<8x8xf32, #tpu.memory_space<vmem>>, vector<8x8xf32>,
      %cst_27 = arith.constant 0.000000e+00 : f32
      %30 = vector.broadcast %cst_27 : f32 to vector<8x1xf32>
      %c0_28 = arith.constant 0 : index
      %c0_29 = arith.constant 0 : index
      %31 = vector.load %arg7[%c0_28, %c0_29] : memref<8x1xf32, #tpu.memory_space<vmem>>, vector<8x1xf32>
      tpu.vector_store %arg7[%c0_28, %c0_29], %30 {strides = array<i32>} : memref<8x1xf32, #tpu.memory_space<vmem>>, vector<8x1xf32>,
      %cst_30 = arith.constant 0.000000e+00 : f32
      %32 = vector.broadcast %cst_30 : f32 to vector<1x8xf32>
      %c0_31 = arith.constant 0 : index
      %c0_32 = arith.constant 0 : index
      %33 = vector.load %arg8[%c0_31, %c0_32] : memref<1x8xf32, #tpu.memory_space<vmem>>, vector<1x8xf32>
      tpu.vector_store %arg8[%c0_31, %c0_32], %32 {strides = array<i32>} : memref<1x8xf32, #tpu.memory_space<vmem>>, vector<1x8xf32>,
    } else {
    }
    %c0 = arith.constant 0 : index
    %c0_4 = arith.constant 0 : index
    %8 = vector.load %arg3[%c0, %c0_4] : memref<8x128xf32, #tpu.memory_space<vmem>>, vector<8x128xf32>
    %c0_5 = arith.constant 0 : index
    %c0_6 = arith.constant 0 : index
    %9 = vector.load %arg4[%c0_5, %c0_6] : memref<8x128xf32, #tpu.memory_space<vmem>>, vector<8x128xf32>
    %c0_7 = arith.constant 0 : index
    %c0_8 = arith.constant 0 : index
    %10 = vector.load %arg6[%c0_7, %c0_8] : memref<8x8xf32, #tpu.memory_space<vmem>>, vector<8x8xf32>
    %cst = arith.constant dense<0.000000e+00> : vector<8x8xf32>
    %11 = tpu.matmul %8, %9, %cst {dimension_numbers = #tpu.dot_dimension_numbers<[1], [1], [0], [0], [0, 0, 1, 0], [], []>} : vector<8x128xf32>, vector<8x128xf32>, vector<8x8xf32> -> vector<8x8xf32>
    %12 = arith.addf %10, %11 : vector<8x8xf32>
    %c0_9 = arith.constant 0 : index
    %c0_10 = arith.constant 0 : index
    %13 = vector.load %arg6[%c0_9, %c0_10] : memref<8x8xf32, #tpu.memory_space<vmem>>, vector<8x8xf32>
    tpu.vector_store %arg6[%c0_9, %c0_10], %12 {strides = array<i32>} : memref<8x8xf32, #tpu.memory_space<vmem>>, vector<8x8xf32>,
    %cst_11 = arith.constant 1.000000e+00 : f32
    %14 = vector.broadcast %cst_11 : f32 to vector<1x128xf32>
    %c0_12 = arith.constant 0 : index
    %c0_13 = arith.constant 0 : index
    %15 = vector.load %arg7[%c0_12, %c0_13] : memref<8x1xf32, #tpu.memory_space<vmem>>, vector<8x1xf32>
    %16 = arith.mulf %8, %8 : vector<8x128xf32>
    %cst_14 = arith.constant dense<0.000000e+00> : vector<8x1xf32>
    %17 = tpu.matmul %16, %14, %cst_14 {dimension_numbers = #tpu.dot_dimension_numbers<[1], [1], [0], [0], [0, 0, 1, 0], [], []>} : vector<8x128xf32>, vector<1x128xf32>, vector<8x1xf32> -> vector<8x1xf32>
    %18 = arith.addf %15, %17 : vector<8x1xf32>
    %c0_15 = arith.constant 0 : index
    %c0_16 = arith.constant 0 : index
    %19 = vector.load %arg7[%c0_15, %c0_16] : memref<8x1xf32, #tpu.memory_space<vmem>>, vector<8x1xf32>
    tpu.vector_store %arg7[%c0_15, %c0_16], %18 {strides = array<i32>} : memref<8x1xf32, #tpu.memory_space<vmem>>, vector<8x1xf32>,
    %c0_17 = arith.constant 0 : index
    %c0_18 = arith.constant 0 : index
    %20 = vector.load %arg8[%c0_17, %c0_18] : memref<1x8xf32, #tpu.memory_space<vmem>>, vector<1x8xf32>
    %21 = arith.mulf %9, %9 : vector<8x128xf32>
    %cst_19 = arith.constant dense<0.000000e+00> : vector<1x8xf32>
    %22 = tpu.matmul %14, %21, %cst_19 {dimension_numbers = #tpu.dot_dimension_numbers<[1], [1], [0], [0], [0, 0, 1, 0], [], []>} : vector<1x128xf32>, vector<8x128xf32>, vector<1x8xf32> -> vector<1x8xf32>
    %23 = arith.addf %20, %22 : vector<1x8xf32>
    %c0_20 = arith.constant 0 : index
    %c0_21 = arith.constant 0 : index
    %24 = vector.load %arg8[%c0_20, %c0_21] : memref<1x8xf32, #tpu.memory_space<vmem>>, vector<1x8xf32>
    tpu.vector_store %arg8[%c0_20, %c0_21], %23 {strides = array<i32>} : memref<1x8xf32, #tpu.memory_space<vmem>>, vector<1x8xf32>,
    %c0_i32_22 = arith.constant 0 : i32
    %25 = arith.cmpi eq, %arg2, %c0_i32_22 : i32
    %26 = arith.extui %25 : i1 to i32
    %c0_i32_23 = arith.constant 0 : i32
    %27 = arith.cmpi ne, %26, %c0_i32_23 : i32
    scf.if %27 {
      %c0_24 = arith.constant 0 : index
      %c0_25 = arith.constant 0 : index
      %28 = vector.load %arg7[%c0_24, %c0_25] : memref<8x1xf32, #tpu.memory_space<vmem>>, vector<8x1xf32>
      %cst_26 = arith.constant 1.000000e-16 : f32
      %29 = vector.broadcast %cst_26 : f32 to vector<8x1xf32>
      %30 = arith.maximumf %28, %29 : vector<8x1xf32>
      %31 = math.rsqrt %30 : vector<8x1xf32>
      %c0_27 = arith.constant 0 : index
      %c0_28 = arith.constant 0 : index
      %32 = vector.load %arg8[%c0_27, %c0_28] : memref<1x8xf32, #tpu.memory_space<vmem>>, vector<1x8xf32>
      %cst_29 = arith.constant 1.000000e-16 : f32
      %33 = vector.broadcast %cst_29 : f32 to vector<1x8xf32>
      %34 = arith.maximumf %32, %33 : vector<1x8xf32>
      %35 = math.rsqrt %34 : vector<1x8xf32>
      %c0_30 = arith.constant 0 : index
      %c0_31 = arith.constant 0 : index
      %36 = vector.load %arg6[%c0_30, %c0_31] : memref<8x8xf32, #tpu.memory_space<vmem>>, vector<8x8xf32>
      %37 = vector.broadcast %31 : vector<8x1xf32> to vector<8x8xf32>
      %38 = arith.mulf %36, %37 : vector<8x8xf32>
      %39 = vector.broadcast %35 : vector<1x8xf32> to vector<8x8xf32>
      %40 = arith.mulf %38, %39 : vector<8x8xf32>
      %c8_i32 = arith.constant 8 : i32
      %41 = arith.muli %arg0, %c8_i32 : i32
      %42 = tpu.iota {dimensions = array<i32: 0>} : vector<8x8xi32>
      %43 = vector.broadcast %41 : i32 to vector<8x8xi32>
      %44 = arith.addi %43, %42 : vector<8x8xi32>
      %c8_i32_32 = arith.constant 8 : i32
      %45 = arith.muli %arg1, %c8_i32_32 : i32
      %46 = tpu.iota {dimensions = array<i32: 1>} : vector<8x8xi32>
      %47 = vector.broadcast %45 : i32 to vector<8x8xi32>
      %48 = arith.addi %47, %46 : vector<8x8xi32>
      %49 = arith.cmpi eq, %44, %48 : vector<8x8xi32>
      %cst_33 = arith.constant 1.000000e+00 : f32
      %50 = vector.broadcast %cst_33 : f32 to vector<8x8xf32>
      %51 = arith.subf %50, %40 : vector<8x8xf32>
      %cst_34 = arith.constant 5.000000e-01 : f32
      %52 = vector.broadcast %cst_34 : f32 to vector<8x8xf32>
      %53 = arith.subf %40, %52 : vector<8x8xf32>
      %cst_35 = arith.constant 0.000000e+00 : f32
      %54 = vector.broadcast %cst_35 : f32 to vector<8x8xf32>
      %55 = arith.maximumf %53, %54 : vector<8x8xf32>
      %56 = arith.select %49, %51, %55 : vector<8x8xi1>, vector<8x8xf32>
      %c8_i32_36 = arith.constant 8 : i32
      %57 = vector.broadcast %c8_i32_36 : i32 to vector<8x8xi32>
      %58 = arith.cmpi slt, %44, %57 : vector<8x8xi32>
      %c8_i32_37 = arith.constant 8 : i32
      %59 = vector.broadcast %c8_i32_37 : i32 to vector<8x8xi32>
      %60 = arith.cmpi slt, %48, %59 : vector<8x8xi32>
      %61 = arith.andi %58, %60 : vector<8x8xi1>
      %cst_38 = arith.constant 0.000000e+00 : f32
      %62 = vector.broadcast %cst_38 : f32 to vector<8x8xf32>
      %63 = arith.select %61, %56, %62 : vector<8x8xi1>, vector<8x8xf32>
      %c0_39 = arith.constant 0 : index
      %64 = memref.load %arg9[%c0_39] : memref<1xf32, #tpu.memory_space<smem>>
      %65 = vector.shape_cast %63 : vector<8x8xf32> to vector<1x8x8xf32>
      %cst_40 = arith.constant dense<0.000000e+00> : vector<1xf32>
      %66 = vector.multi_reduction <add>, %65, %cst_40 [1, 2] : vector<1x8x8xf32> to vector<1xf32>
      %67 = vector.shape_cast %66 : vector<1xf32> to vector<1x1x1xf32>
      %68 = vector.extract %67[0, 0, 0] : f32 from vector<1x1x1xf32>
      %69 = arith.addf %64, %68 : f32
      %c0_41 = arith.constant 0 : index
      %70 = memref.load %arg9[%c0_41] : memref<1xf32, #tpu.memory_space<smem>>
      memref.store %69, %arg9[%c0_41] : memref<1xf32, #tpu.memory_space<smem>>
      %71 = tpu.iota {dimensions = array<i32: 0>} : vector<8x128xi32>
      %72 = tpu.iota {dimensions = array<i32: 1>} : vector<8x128xi32>
      %c0_i32_42 = arith.constant 0 : i32
      %73 = vector.broadcast %c0_i32_42 : i32 to vector<8x128xi32>
      %74 = arith.cmpi eq, %71, %73 : vector<8x128xi32>
      %c0_i32_43 = arith.constant 0 : i32
      %75 = vector.broadcast %c0_i32_43 : i32 to vector<8x128xi32>
      %76 = arith.cmpi eq, %72, %75 : vector<8x128xi32>
      %77 = arith.andi %74, %76 : vector<8x128xi1>
      %c0_44 = arith.constant 0 : index
      %78 = memref.load %arg9[%c0_44] : memref<1xf32, #tpu.memory_space<smem>>
      %cst_45 = arith.constant 0.000000e+00 : f32
      %79 = vector.broadcast %78 : f32 to vector<8x128xf32>
      %80 = vector.broadcast %cst_45 : f32 to vector<8x128xf32>
      %81 = arith.select %77, %79, %80 : vector<8x128xi1>, vector<8x128xf32>
      %c0_46 = arith.constant 0 : index
      %c0_47 = arith.constant 0 : index
      %82 = vector.load %arg5[%c0_46, %c0_47] : memref<8x128xf32, #tpu.memory_space<vmem>>, vector<8x128xf32>
      tpu.vector_store %arg5[%c0_46, %c0_47], %81 {strides = array<i32>} : memref<8x128xf32, #tpu.memory_space<vmem>>, vector<8x128xf32>,
    } else {
    }
    return
  }
  func.func @transform_0(%arg0: i32, %arg1: i32, %arg2: i32) -> (i32, i32) {
    %c0_i32 = arith.constant 0 : i32
    return %arg0, %arg2 : i32, i32
  }
  func.func @transform_1(%arg0: i32, %arg1: i32, %arg2: i32) -> (i32, i32) {
    %c0_i32 = arith.constant 0 : i32
    return %arg1, %arg2 : i32, i32
  }
  func.func @transform_2(%arg0: i32, %arg1: i32, %arg2: i32) -> (i32, i32) {
    %c0_i32 = arith.constant 0 : i32
    %c0_i32_0 = arith.constant 0 : i32
    return %arg0, %c0_i32 : i32, i32
  }
}

</mosaic_0001>

<bundles_post_ra>
// kernel: tpu_custom_call.1
= control target key start
LH: loop header
LB: loop body
LE: loop exit
PB: predicated region body
PF: predicated region fallthrough
CT: control target
= control target key end

     0   :  { %7 = vsyncpa [#allocation7], 0  ;;  %s423_s0 = inlined_call_operand.hbm [shape: f32[8,128], index: 0, kind: input, shape index: {}]   ;;  %s424_s1 = inlined_call_operand.hbm [shape: f32[8,128], index: 1, kind: input, shape index: {}]   ;;  %s425_s2 = inlined_call_operand.hbm [shape: f32[8,128], index: 2, kind: output, shape index: {}]  }
   0x1   :  { %8 = vsyncpa [#allocation10], 0 }
   0x2   :  { %9 = vsyncpa [#allocation8], 0  ;;  %s385_s9 = smov [#allocation6]   ;;  %s386_s11 = smov [#allocation9]  }
   0x3   :  { %s16_s10 = sshll.u32 %s385_s9, 4  ;;  %s26_s12 = sshll.u32 %s386_s11, 4  ;;  %s17_s10 = int_to_ptr.vmem [resolvable:$true] %s16_s10  ;;  %s27_s12 = int_to_ptr.vmem [resolvable:$true] %s26_s12 }
   0x4   :  { %s327_s13 = scalar_lea.vmem %s17_s10, 128  ;;  %p332_p1 = scmp.lt.s32.totalorder %s17_s10, %s17_s10 }
   0x5   :  { %p328_p0 = scmp.ne.s32.totalorder %s17_s10, %s327_s13  ;;  %p333_p2 = scmp.lt.s32.totalorder %s327_s13, %s327_s13 }
   0x7   :  { %p334_p3 = por %p333_p2, %p332_p1 }
   0x9   :  { %p335_p4 = pnand %p334_p3, %p328_p0 }
   0xb   :  { %338 = shalt.err (!%p335_p4)
}
   0xc   :  { %19 = dma.hbm_to_vmem [thread:$0]  %s423_s0, 128, %s17_s10, [#allocation7]  }
   0xd   :  { %s347_s16 = scalar_lea.vmem %s27_s12, 128  ;;  %p352_p6 = scmp.lt.s32.totalorder %s27_s12, %s27_s12 }
   0xe   :  { %p348_p5 = scmp.ne.s32.totalorder %s27_s12, %s347_s16  ;;  %p353_p7 = scmp.lt.s32.totalorder %s347_s16, %s347_s16 }
  0x10   :  { %p354_p8 = por %p353_p7, %p352_p6 }
  0x12   :  { %p355_p9 = pnand %p354_p8, %p348_p5 }
  0x14   :  { %358 = shalt.err (!%p355_p9)
}
  0x15   :  { %29 = dma.hbm_to_vmem [thread:$0]  %s424_s1, 128, %s27_s12, [#allocation10]  }
  0x16   :  { %379 = dma.done.wait [#allocation7], 128  }
  0x17   :  { %380 = vsyncadd [#allocation7], 4294967168 }
  0x18   :  { %381 = dma.done.wait [#allocation10], 128  }
  0x19   :  { %382 = vsyncadd [#allocation10], 4294967168  ;;  %vm49_vm0 = vcmask 7168   ;;  %v387_v0 = vmov 0.0   ;;  %vm388_vm1 = vmmov 0   ;;  %v53_v1 = vld [vmem:[#allocation6] sm:$0xff]  ;;  %v228_v23 = vlaneseq }
  0x1a   :  { %300 = vmatprep.subr.mxu1 %v387_v0  ;;  %302 = vmatprep.mubr.msk.f32.mxu1 %vm388_vm1, %v387_v0  ;;  %50 = vst.msk [vmem:[#allocation3] sm:$0xff] %vm49_vm0, %v387_v0  ;;  %v54_v2 = vld [vmem:[#allocation9] sm:$0xff]  ;;  %v130_v3 = vmul.f32 %v53_v1, %v53_v1  ;;  %v389_v5 = vmov 1.0   ;;  %v390_v6 = vmov 0   ;;  %vm51_vm2 = vcmask 57344   ;;  %s391_s0 = smov [#allocation11]  }
  0x1b   :  { %295 = vmatprep.subr.mxu0 %v387_v0  ;;  %297 = vmatprep.mubr.msk.f32.mxu0 %vm388_vm1, %v387_v0  ;;  %v137_v4 = vmul.f32 %v54_v2, %v54_v2  ;;  %52 = vst.msk [vmem:[#allocation4] sm:$0x1] %vm51_vm2, %v387_v0  ;;  %vm47_vm3 = vcmask 64512   ;;  %v229_v24 = vshrl.u32 %v228_v23, 7  ;;  %v241_v31 = vand.u32 127, %v228_v23  ;;  %s280_s1 = sshll.u32 %s391_s0, 4  ;;  %s281_s1 = int_to_ptr.vmem [resolvable:$true] %s280_s1 }
  0x1c   :  { %296 = vmatpush3.xpose.msra.mxu0 %v54_v2  ;;  %131 = vadd.xlane.f32.xlu0 %v130_v3  ;;  %48 = vst.msk [vmem:[#allocation2] sm:$0xff] %vm47_vm3, %v387_v0  ;;  %s359_s20 = scalar_lea.vmem %s281_s1, 128  ;;  %p364_p11 = scmp.lt.s32.totalorder %s281_s1, %s281_s1 }
  0x1d   :  { %301 = vmatpush3.xpose.msra.mxu1 %v137_v4  ;;  %314 = vset.pattern.permute.xlu0 %v390_v6  ;;  %v230_v25 = vsub.s32 0, %v229_v24  ;;  %vm244_vm4 = vcmp.eq.s32.totalorder %v229_v24, %v241_v31  ;;  %vm250_vm5 = vcmp.lt.s32.totalorder %v241_v31, 8  ;;  %vm267_vm6 = vcmp.eq.s32.totalorder %v229_v24, 0  ;;  %p360_p10 = scmp.ne.s32.totalorder %s281_s1, %s359_s20  ;;  %p365_p12 = scmp.lt.s32.totalorder %s359_s20, %s359_s20 }
  0x1e   :  { %vm268_vm7 = vcmp.eq.s32.totalorder %v241_v31, 0 }
  0x1f   :  { %298 = vmatmul.mubr.f32.vlgmr.msra.gmra.mxu0 %v53_v1  ;;  %vm269_vm8 = vmand %vm267_vm6, %vm268_vm7  ;;  %p366_p13 = por %p365_p12, %p364_p11 }
  0x20   :  { %303 = vmatmul.mubr.f32.vlgmr.msra.gmra.mxu1 %v389_v5 }
  0x21   :  { %v129_v7 = vld [vmem:[#allocation3] sm:$0xff]  ;;  %p367_p0 = pnand %p366_p13, %p360_p10 }
  0x22   :  { %v136_v14 = vld [vmem:[#allocation4] sm:$0x1] }
  0x23   :  { %v55_v13 = vld [vmem:[#allocation2] sm:$0xff] }
  0xa5   :  { %v132_v8 = vpop.xlane.xlu0 %131 }
  0xa6   :  { %v133_v9 = vadd.f32 %v132_v8, %v129_v7 }
  0xa8   :  { %135 = vst.msk [vmem:[#allocation3] sm:$0xff] %vm49_vm0, %v133_v9 }
  0xaf   :  { %v214_v10 = vld [vmem:[#allocation3] sm:$0xff] }
  0xb0   :  { %v215_v11 = vmax.f32 %v214_v10, 1e-16 }
  0xb2   :  { %315 = vrsqrt.f32 %v215_v11 }
  0xbf   :  { %v316_v12 = vpop.eup %315 }
  0xc0   :  { %223 = vperm.xlu0 %314, %v316_v12  }
  0xdf   :  { %v122_v15 = vpop.f32.mrf.mxu0 }
  0xe0   :  { %v126_v16 = vadd.f32 %v122_v15, %v55_v13  ;;  %v204_v17 = vpop.f32.mrf.mxu1 }
  0xe1   :  { %v299_v18 = vpop.f32.mrf.mxu0  ;;  %v208_v19 = vadd.f32 %v204_v17, %v136_v14 }
  0xe2   :  { %128 = vst.msk [vmem:[#allocation2] sm:$0xff] %vm47_vm3, %v126_v16  ;;  %v304_v20 = vpop.f32.mrf.mxu1 }
  0xe3   :  { %210 = vst.msk [vmem:[#allocation4] sm:$0x1] %vm51_vm2, %v208_v19 }
  0xe9   :  { %v220_v27 = vld [vmem:[#allocation2] sm:$0xff] }
  0xea   :  { %v217_v21 = vld [vmem:[#allocation4] sm:$0x1] }
  0xeb   :  { %v218_v22 = vmax.f32 %v217_v21, 1e-16 }
  0xed   :  { %317 = vrsqrt.f32 %v218_v22 }
  0xfa   :  { %v318_v26 = vpop.eup %317 }
  0xfb   :  { %v231_v28 = vrot.slane %v318_v26, %v230_v25 }
 0x13b   :  { %v224_v29 = vpop.permute.xlu0 %223 }
 0x13c   :  { %v226_v30 = vmul.f32 %v224_v29, %v220_v27 }
 0x13e   :  { %v233_v32 = vmul.f32 %v231_v28, %v226_v30 }
 0x140   :  { %v290_v33 = vadd.f32 -0.5, %v233_v32  ;;  %v245_v34 = vsub.f32 1.0, %v233_v32 }
 0x142   :  { %v247_v35 = vmax.f32 %v290_v33, 0.0 }
 0x144   :  { %v248_v36 = vsel %vm244_vm4, %v245_v34, %v247_v35 }
 0x145   :  { %v252_v37 = vsel %vm250_vm5, %v248_v36, 0.0 }
 0x146   :  { %v254_v38 = vsel %vm47_vm3, %v252_v37, 0.0 }
 0x147   :  { %255 = vadd.xlane.f32.xlu1 %v254_v38 }
 0x1d0   :  { %v256_v39 = vpop.xlane.xlu1 %255 }
 0x1d1   :  { %v257_v40 = vrot.slane %v256_v39, 4 }
 0x1d3   :  { %v258_v41 = vadd.f32 %v257_v40, %v256_v39 }
 0x1d5   :  { %v259_v42 = vrot.slane %v258_v41, 2 }
 0x1d7   :  { %v260_v43 = vadd.f32 %v259_v42, %v258_v41 }
 0x1d9   :  { %v261_v44 = vrot.slane %v260_v43, 1 }
 0x1db   :  { %v262_v45 = vadd.f32 %v261_v44, %v260_v43 }
 0x1dd   :  { %305 = vpush %v262_v45 }
 0x20e   :  { %s306_s19 = spop %305 }
 0x20f   :  { %v271_v46 = vstv %s306_s19 }
 0x210   :  { %v272_v47 = vsel %vm269_vm8, %v271_v46, 0.0 }
 0x211   :  { %273 = vst [vmem:[#allocation11] sm:$0xff] %v272_v47 }
 0x212   :  { %370 = shalt.err (!%p367_p0)
}
 0x213   :  { %283 = dma.vmem_to_hbm [thread:$0]  %s281_s1, 128, %s425_s2, [#allocation8]  }
 0x214   :  { %383 = dma.done.wait [#allocation8], 128  }
 0x215   :  { %384 = vsyncadd [#allocation8], 4294967168 }
 0x216   :  { %287 = vsyncpa [#allocation7], 1 }
 0x217   :  { %288 = vsyncpa [#allocation10], 1 }
 0x218   :  { %289 = vsyncpa [#allocation8], 1 }

</bundles_post_ra>
